<compile_context>
chip_gen: v5e
topology: v5e:2x2
jax: 0.10.0
libtpu: 0.0.40
codegen_flags: <defaults>
</compile_context>

<pallas_src>
import functools
import math

import jax
import jax.numpy as jnp
from jax.experimental import pallas as pl
from jax.experimental.pallas import tpu as pltpu

LANE = 128
SUBLANE = 8


def _round_up(x, m):
    return (x + m - 1) // m * m


def simple_ac_kernel(x_ref, w1_ref, b1_ref, w2_ref, b2_ref, wh_ref, bh_ref, out_ref):
    # x and weights are bf16 (MXU-native); accumulate in f32; bias/ReLU in f32.
    h = jnp.dot(x_ref[...], w1_ref[...], preferred_element_type=jnp.float32) + b1_ref[...]
    h = jnp.maximum(h, 0.0)
    h2 = (
        jnp.dot(h.astype(jnp.bfloat16), w2_ref[...], preferred_element_type=jnp.float32)
        + b2_ref[...]
    )
    # Fused decision heads + value head in one lane-dense matmul.
    out_ref[...] = (
        jnp.dot(h2.astype(jnp.bfloat16), wh_ref[...], preferred_element_type=jnp.float32)
        + bh_ref[...]
    ).astype(out_ref.dtype)


@functools.partial(jax.jit, static_argnames=("num_actions", "num_decisions"))
def simple_ac_forward(obs, packed, *, num_actions, num_decisions):
    """obs: (B, ...) -> (logits (B, A, D), value (B,))."""
    w1, b1, w2, b2, wh, bh = packed
    B = obs.shape[0]
    x = obs.reshape(B, -1)                      # obs.flatten(1)
    input_dim = x.shape[1]

    in_p, H_p = w1.shape                        # already 128-padded
    out_p = wh.shape[1]

    # Batch tile: big B -> 512-row pipelined tiles; tiny B -> one 8-row block.
    bm = 512 if B >= 512 else _round_up(B, SUBLANE)
    B_p = _round_up(B, bm)

    # Zero-pad batch + feature dims; cast activations to bf16 for the MXU / DMA.
    xp = jnp.pad(x, ((0, B_p - B), (0, in_p - input_dim))).astype(jnp.bfloat16)

    flops = 2 * B_p * (in_p * H_p + H_p * H_p + H_p * out_p)
    bytes_accessed = (
        xp.size * 2
        + (w1.size + w2.size + wh.size) * 2
        + (b1.size + b2.size + bh.size) * 4
        + B_p * out_p * 4
    )

    out = pl.pallas_call(
        simple_ac_kernel,
        out_shape=jax.ShapeDtypeStruct((B_p, out_p), jnp.float32),
        grid=(B_p // bm,),
        in_specs=[
            pl.BlockSpec((bm, in_p), lambda i: (i, 0)),     # x tile (pipelined)
            pl.BlockSpec((in_p, H_p), lambda i: (0, 0)),    # W1 (resident)
            pl.BlockSpec((1, H_p), lambda i: (0, 0)),       # b1
            pl.BlockSpec((H_p, H_p), lambda i: (0, 0)),     # W2 (resident)
            pl.BlockSpec((1, H_p), lambda i: (0, 0)),       # b2
            pl.BlockSpec((H_p, out_p), lambda i: (0, 0)),   # fused heads (resident)
            pl.BlockSpec((1, out_p), lambda i: (0, 0)),     # fused bias
        ],
        out_specs=pl.BlockSpec((bm, out_p), lambda i: (i, 0)),
        compiler_params=pltpu.CompilerParams(
            dimension_semantics=("parallel",),              # split batch across TCs on v7x
        ),
        cost_estimate=pl.CostEstimate(
            flops=flops, transcendentals=0, bytes_accessed=bytes_accessed
        ),
    )(xp, w1, b1, w2, b2, wh, bh)

    out = out[:B]
    ad = num_actions * num_decisions
    logits = out[:, :ad].reshape(B, num_actions, num_decisions)
    value = out[:, ad]                                      # fused value-head column
    return logits, value


# ------------------------ parameter construction ------------------------

def init_linear(key, in_f, out_f):
    """PyTorch nn.Linear-style init; W stored as (in_f, out_f), b as (1, out_f)."""
    kw, kb = jax.random.split(key)
    bound = 1.0 / math.sqrt(in_f)
    w = jax.random.uniform(kw, (in_f, out_f), jnp.float32, -bound, bound)
    b = jax.random.uniform(kb, (1, out_f), jnp.float32, -bound, bound)
    return w, b


def make_params(key, states, num_decisions, num_actions, hidden_n, obs_capacity):
    """Unpadded f32 parameters (used by the pure-JAX reference)."""
    input_dim = (num_decisions + 1) * obs_capacity * states
    keys = jax.random.split(key, 3 + num_actions)

    w1, b1 = init_linear(keys[0], input_dim, hidden_n)
    w2, b2 = init_linear(keys[1], hidden_n, hidden_n)
    wv, bv = init_linear(keys[2], hidden_n, 1)

    wds, bds = [], []
    for a in range(num_actions):
        wa, ba = init_linear(keys[3 + a], hidden_n, num_decisions)
        wds.append(wa)
        bds.append(ba)
    wd = jnp.concatenate(wds, axis=1)           # (H, A*D)
    bd = jnp.concatenate(bds, axis=1)           # (1, A*D)

    return (w1, b1, w2, b2, wd, bd, wv, bv), input_dim


def pack_params(params):
    """Fuse value head into the decision-head matmul, pad lane dims to 128,
    cast matmul weights to bf16 (biases stay f32)."""
    w1, b1, w2, b2, wd, bd, wv, bv = params
    input_dim, hidden_n = w1.shape
    ad = wd.shape[1]

    wh = jnp.concatenate([wd, wv], axis=1)      # (H, A*D + 1)
    bh = jnp.concatenate([bd, bv], axis=1)      # (1, A*D + 1)

    in_p = _round_up(input_dim, LANE)
    h_p = _round_up(hidden_n, LANE)
    out_p = _round_up(ad + 1, LANE)

    def pad2(a, rows, cols):
        return jnp.pad(a, ((0, rows - a.shape[0]), (0, cols - a.shape[1])))

    w1p = pad2(w1, in_p, h_p).astype(jnp.bfloat16)
    b1p = pad2(b1, 1, h_p)                      # f32
    w2p = pad2(w2, h_p, h_p).astype(jnp.bfloat16)
    b2p = pad2(b2, 1, h_p)                      # f32
    whp = pad2(wh, h_p, out_p).astype(jnp.bfloat16)
    bhp = pad2(bh, 1, out_p)                    # f32
    return (w1p, b1p, w2p, b2p, whp, bhp)


def reference_forward(obs, params, num_actions, num_decisions):
    """Pure-JAX f32 reference mirroring the PyTorch module (training mode)."""
    w1, b1, w2, b2, wd, bd, wv, bv = params
    x = obs.reshape(obs.shape[0], -1)
    h = jnp.maximum(x @ w1 + b1, 0.0)
    h2 = h @ w2 + b2
    logits = (h2 @ wd + bd).reshape(obs.shape[0], num_actions, num_decisions)
    v = (h2 @ wv + bv).reshape(-1)
    return logits, v


if __name__ == "__main__":
    # Small config: states=8, actions=(3, 4) -> num_decisions=3, num_actions=4
    states = 8
    num_decisions, num_actions = 3, 4
    hidden_n = 32
    obs_capacity = 1
    B = 2

    key = jax.random.PRNGKey(0)
    k_params, k_obs = jax.random.split(key)

    params, input_dim = make_params(
        k_params, states, num_decisions, num_actions, hidden_n, obs_capacity
    )
    packed = pack_params(params)

    # obs flattens (dim>=1) to input_dim: (B, num_decisions+1, obs_capacity, states)
    obs = jax.random.normal(
        k_obs, (B, num_decisions + 1, obs_capacity, states), jnp.float32
    )

    logits, value = simple_ac_forward(
        obs, packed, num_actions=num_actions, num_decisions=num_decisions
    )
    logits = jax.block_until_ready(logits)
    value = jax.block_until_ready(value)

    ref_logits, ref_value = reference_forward(obs, params, num_actions, num_decisions)

    assert logits.shape == (B, num_actions, num_decisions)
    assert value.shape == (B,)
    # bf16 matmul operands -> tolerance loosened vs. the pure-f32 reference.
    assert jnp.allclose(logits, ref_logits, atol=2e-2, rtol=2e-2)
    assert jnp.allclose(value, ref_value, atol=2e-2, rtol=2e-2)

    print("KERNEL_OK")
</pallas_src>

<mosaic_0001>
module attributes {stable_mosaic.version = 11 : i64} {
  func.func @simple_ac_kernel(%arg0: i32, %arg1: memref<8x128xbf16, #tpu.memory_space<vmem>>, %arg2: memref<128x128xbf16, #tpu.memory_space<vmem>>, %arg3: memref<1x128xf32, #tpu.memory_space<vmem>>, %arg4: memref<128x128xbf16, #tpu.memory_space<vmem>>, %arg5: memref<1x128xf32, #tpu.memory_space<vmem>>, %arg6: memref<128x128xbf16, #tpu.memory_space<vmem>>, %arg7: memref<1x128xf32, #tpu.memory_space<vmem>>, %arg8: memref<8x128xf32, #tpu.memory_space<vmem>>) attributes {dimension_semantics = [#tpu.dimension_semantics<parallel>], iteration_bounds = array<i64: 1>, scalar_prefetch = 0 : i64, scratch_operands = 0 : i64, tpu.core_type = #tpu.core_type<tc>, window_params = [{transform_indices = @transform_0, window_bounds = array<i64: 8, 128>}, {pipeline_mode = #tpu.pipeline_mode<synchronous>, transform_indices = @transform_1, window_bounds = array<i64: 128, 128>}, {pipeline_mode = #tpu.pipeline_mode<synchronous>, transform_indices = @transform_2, window_bounds = array<i64: 1, 128>}, {pipeline_mode = #tpu.pipeline_mode<synchronous>, transform_indices = @transform_3, window_bounds = array<i64: 128, 128>}, {pipeline_mode = #tpu.pipeline_mode<synchronous>, transform_indices = @transform_4, window_bounds = array<i64: 1, 128>}, {pipeline_mode = #tpu.pipeline_mode<synchronous>, transform_indices = @transform_5, window_bounds = array<i64: 128, 128>}, {pipeline_mode = #tpu.pipeline_mode<synchronous>, transform_indices = @transform_6, window_bounds = array<i64: 1, 128>}, {transform_indices = @transform_7, window_bounds = array<i64: 8, 128>}]} {
    %c0 = arith.constant 0 : index
    %c0_0 = arith.constant 0 : index
    %0 = vector.load %arg1[%c0, %c0_0] : memref<8x128xbf16, #tpu.memory_space<vmem>>, vector<8x128xbf16>
    %c0_1 = arith.constant 0 : index
    %c0_2 = arith.constant 0 : index
    %1 = vector.load %arg2[%c0_1, %c0_2] : memref<128x128xbf16, #tpu.memory_space<vmem>>, vector<128x128xbf16>
    %cst = arith.constant dense<0.000000e+00> : vector<8x128xf32>
    %2 = tpu.matmul %0, %1, %cst {dimension_numbers = #tpu.dot_dimension_numbers<[1], [0], [0], [1], [0, 0, 1, 1], [], []>} : vector<8x128xbf16>, vector<128x128xbf16>, vector<8x128xf32> -> vector<8x128xf32>
    %c0_3 = arith.constant 0 : index
    %c0_4 = arith.constant 0 : index
    %3 = vector.load %arg3[%c0_3, %c0_4] : memref<1x128xf32, #tpu.memory_space<vmem>>, vector<1x128xf32>
    %4 = vector.broadcast %3 : vector<1x128xf32> to vector<8x128xf32>
    %5 = arith.addf %2, %4 : vector<8x128xf32>
    %cst_5 = arith.constant 0.000000e+00 : f32
    %6 = vector.broadcast %cst_5 : f32 to vector<8x128xf32>
    %7 = arith.maximumf %5, %6 : vector<8x128xf32>
    %8 = arith.truncf %7 : vector<8x128xf32> to vector<8x128xbf16>
    %c0_6 = arith.constant 0 : index
    %c0_7 = arith.constant 0 : index
    %9 = vector.load %arg4[%c0_6, %c0_7] : memref<128x128xbf16, #tpu.memory_space<vmem>>, vector<128x128xbf16>
    %cst_8 = arith.constant dense<0.000000e+00> : vector<8x128xf32>
    %10 = tpu.matmul %8, %9, %cst_8 {dimension_numbers = #tpu.dot_dimension_numbers<[1], [0], [0], [1], [0, 0, 1, 1], [], []>} : vector<8x128xbf16>, vector<128x128xbf16>, vector<8x128xf32> -> vector<8x128xf32>
    %c0_9 = arith.constant 0 : index
    %c0_10 = arith.constant 0 : index
    %11 = vector.load %arg5[%c0_9, %c0_10] : memref<1x128xf32, #tpu.memory_space<vmem>>, vector<1x128xf32>
    %12 = vector.broadcast %11 : vector<1x128xf32> to vector<8x128xf32>
    %13 = arith.addf %10, %12 : vector<8x128xf32>
    %14 = arith.truncf %13 : vector<8x128xf32> to vector<8x128xbf16>
    %c0_11 = arith.constant 0 : index
    %c0_12 = arith.constant 0 : index
    %15 = vector.load %arg6[%c0_11, %c0_12] : memref<128x128xbf16, #tpu.memory_space<vmem>>, vector<128x128xbf16>
    %cst_13 = arith.constant dense<0.000000e+00> : vector<8x128xf32>
    %16 = tpu.matmul %14, %15, %cst_13 {dimension_numbers = #tpu.dot_dimension_numbers<[1], [0], [0], [1], [0, 0, 1, 1], [], []>} : vector<8x128xbf16>, vector<128x128xbf16>, vector<8x128xf32> -> vector<8x128xf32>
    %c0_14 = arith.constant 0 : index
    %c0_15 = arith.constant 0 : index
    %17 = vector.load %arg7[%c0_14, %c0_15] : memref<1x128xf32, #tpu.memory_space<vmem>>, vector<1x128xf32>
    %18 = vector.broadcast %17 : vector<1x128xf32> to vector<8x128xf32>
    %19 = arith.addf %16, %18 : vector<8x128xf32>
    %c0_16 = arith.constant 0 : index
    %c0_17 = arith.constant 0 : index
    %20 = vector.load %arg8[%c0_16, %c0_17] : memref<8x128xf32, #tpu.memory_space<vmem>>, vector<8x128xf32>
    tpu.vector_store %arg8[%c0_16, %c0_17], %19 {strides = array<i32>} : memref<8x128xf32, #tpu.memory_space<vmem>>, vector<8x128xf32>,
    return
  }
  func.func @transform_0(%arg0: i32) -> (i32, i32) {
    %c0_i32 = arith.constant 0 : i32
    %c0_i32_0 = arith.constant 0 : i32
    return %arg0, %c0_i32 : i32, i32
  }
  func.func @transform_1(%arg0: i32) -> (i32, i32) {
    %c0_i32 = arith.constant 0 : i32
    %c0_i32_0 = arith.constant 0 : i32
    %c0_i32_1 = arith.constant 0 : i32
    return %c0_i32, %c0_i32_0 : i32, i32
  }
  func.func @transform_2(%arg0: i32) -> (i32, i32) {
    %c0_i32 = arith.constant 0 : i32
    %c0_i32_0 = arith.constant 0 : i32
    %c0_i32_1 = arith.constant 0 : i32
    return %c0_i32, %c0_i32_0 : i32, i32
  }
  func.func @transform_3(%arg0: i32) -> (i32, i32) {
    %c0_i32 = arith.constant 0 : i32
    %c0_i32_0 = arith.constant 0 : i32
    %c0_i32_1 = arith.constant 0 : i32
    return %c0_i32, %c0_i32_0 : i32, i32
  }
  func.func @transform_4(%arg0: i32) -> (i32, i32) {
    %c0_i32 = arith.constant 0 : i32
    %c0_i32_0 = arith.constant 0 : i32
    %c0_i32_1 = arith.constant 0 : i32
    return %c0_i32, %c0_i32_0 : i32, i32
  }
  func.func @transform_5(%arg0: i32) -> (i32, i32) {
    %c0_i32 = arith.constant 0 : i32
    %c0_i32_0 = arith.constant 0 : i32
    %c0_i32_1 = arith.constant 0 : i32
    return %c0_i32, %c0_i32_0 : i32, i32
  }
  func.func @transform_6(%arg0: i32) -> (i32, i32) {
    %c0_i32 = arith.constant 0 : i32
    %c0_i32_0 = arith.constant 0 : i32
    %c0_i32_1 = arith.constant 0 : i32
    return %c0_i32, %c0_i32_0 : i32, i32
  }
  func.func @transform_7(%arg0: i32) -> (i32, i32) {
    %c0_i32 = arith.constant 0 : i32
    %c0_i32_0 = arith.constant 0 : i32
    return %arg0, %c0_i32 : i32, i32
  }
}

</mosaic_0001>

<bundles_post_ra>
// kernel: simple_ac_forward.1
= control target key start
LH: loop header
LB: loop body
LE: loop exit
PB: predicated region body
PF: predicated region fallthrough
CT: control target
= control target key end

     0   :  { %12 = vsyncpa [#allocation3], 0  ;;  %s600_s0 = inlined_call_operand.vmem [shape: bf16[8,128], index: 0, kind: input, shape index: {}]   ;;  %s601_s1 = inlined_call_operand.hbm [shape: bf16[128,128], index: 1, kind: input, shape index: {}]   ;;  %s602_s2 = inlined_call_operand.vmem [shape: f32[1,128], index: 2, kind: input, shape index: {}]   ;;  %s603_s3 = inlined_call_operand.hbm [shape: bf16[128,128], index: 3, kind: input, shape index: {}]   ;;  %s604_s4 = inlined_call_operand.vmem [shape: f32[1,128], index: 4, kind: input, shape index: {}]   ;;  %s605_s5 = inlined_call_operand.hbm [shape: bf16[128,128], index: 5, kind: input, shape index: {}]   ;;  %s606_s6 = inlined_call_operand.vmem [shape: f32[1,128], index: 6, kind: input, shape index: {}]   ;;  %s607_s7 = inlined_call_operand.vmem [shape: f32[8,128], index: 7, kind: output, shape index: {}]  }
   0x1   :  { %13 = vsyncpa [#allocation5], 0  ;;  %s35_s26 = sshll.u32 %s603_s3, 4  ;;  %s531_s27 = smov [#allocation4]   ;;  %s36_s26 = int_to_ptr.hbm [resolvable:$true] %s35_s26 }
   0x2   :  { %s37_s28 = sshll.u32 %s531_s27, 4  ;;  %s20_s8 = sshll.u32 %s601_s1, 4  ;;  %s38_s28 = int_to_ptr.vmem [resolvable:$true] %s37_s28  ;;  %s21_s8 = int_to_ptr.hbm [resolvable:$true] %s20_s8 }
   0x3   :  { %s532_s9 = smov 64   ;;  %s533_s10 = smov 4  }
   0x4   :  { %43 = dma.hbm_to_vmem [thread:$0]  %s36_s26, 1024, %s38_s28, [#allocation5], %s532_s9, %s532_s9, %s533_s10  }
   0x5   :  { %s534_s11 = smov [#allocation2]   ;;  %s50_s15 = sshll.u32 %s605_s5, 4  ;;  %s51_s15 = int_to_ptr.hbm [resolvable:$true] %s50_s15 }
   0x6   :  { %s22_s12 = sshll.u32 %s534_s11, 4  ;;  %s535_s3 = smov [#allocation6]   ;;  %s23_s12 = int_to_ptr.vmem [resolvable:$true] %s22_s12 }
   0x7   :  { %28 = dma.hbm_to_vmem [thread:$0]  %s21_s8, 1024, %s23_s12, [#allocation3], %s532_s9, %s532_s9, %s533_s10  }
   0x8   :  { %s52_s16 = sshll.u32 %s535_s3, 4  ;;  %s53_s16 = int_to_ptr.vmem [resolvable:$true] %s52_s16 }
   0x9   :  { %58 = dma.hbm_to_vmem [thread:$0]  %s51_s15, 1024, %s53_s16, [#allocation5], %s532_s9, %s532_s9, %s533_s10  }
   0xa   :  { %527 = dma.done.wait [#allocation3], 1024  }
   0xb   :  { %528 = vsyncadd [#allocation3], 4294966272 }
   0xc   :  { %529 = dma.done.wait [#allocation5], 2048  }
   0xd   :  { %530 = vsyncadd [#allocation5], 4294965248  ;;  %v430_v0 = vld [vmem:[#allocation2 + $0x38] sm:$0xff]  ;;  %v429_v1 = vld [vmem:[#allocation2 + $0x30] sm:$0xff] }
   0xe   :  { %142 = vmatpush.bf16.msra.mxu0 %v430_v0  ;;  %v438_v2 = vld [vmem:[#allocation4 + $0x38] sm:$0xff]  ;;  %v437_v3 = vld [vmem:[#allocation4 + $0x30] sm:$0xff]  ;;  %v428_v4 = vld [vmem:[#allocation2 + $0x28] sm:$0xff] }
   0xf   :  { %225 = vmatpush.bf16.msra.mxu1 %v438_v2  ;;  %v436_v5 = vld [vmem:[#allocation4 + $0x28] sm:$0xff]  ;;  %v427_v6 = vld [vmem:[#allocation2 + $0x20] sm:$0xff]  ;;  %v426_v8 = vld [vmem:[#allocation2 + $0x18] sm:$0xff] }
  0x10   :  { %v435_v7 = vld [vmem:[#allocation4 + $0x20] sm:$0xff]  ;;  %v434_v9 = vld [vmem:[#allocation4 + $0x18] sm:$0xff]  ;;  %v425_v10 = vld [vmem:[#allocation2 + $0x10] sm:$0xff] }
  0x11   :  { %v433_v11 = vld [vmem:[#allocation4 + $0x10] sm:$0xff]  ;;  %v424_v12 = vld [vmem:[#allocation2 + $0x8] sm:$0xff]  ;;  %v423_v13 = vld [vmem:[#allocation2] sm:$0xff] }
  0x12   :  { %143 = vmatpush.bf16.msra.mxu0 %v429_v1  ;;  %v73_v14 = vld [vmem:[%s600_s0] sm:$0xf]  ;;  %v432_v15 = vld [vmem:[#allocation4 + $0x8] sm:$0xff]  ;;  %v446_v17 = vld [vmem:[#allocation6 + $0x38] sm:$0xff] }
  0x13   :  { %226 = vmatpush.bf16.msra.mxu1 %v437_v3  ;;  %v431_v16 = vld [vmem:[#allocation4] sm:$0xff]  ;;  %307 = vmatpush.bf16.msra.mxu2 %v446_v17  ;;  %v445_v18 = vld [vmem:[#allocation6 + $0x30] sm:$0xff]  ;;  %v444_v19 = vld [vmem:[#allocation6 + $0x28] sm:$0xff] }
  0x14   :  { %v443_v20 = vld [vmem:[#allocation6 + $0x20] sm:$0xff]  ;;  %v442_v21 = vld [vmem:[#allocation6 + $0x18] sm:$0xff]  ;;  %v441_v22 = vld [vmem:[#allocation6 + $0x10] sm:$0xff] }
  0x15   :  { %v452_v23 = vld [vmem:[%s602_s2] ss:$0 sm:$0xff]  ;;  %v440_v24 = vld [vmem:[#allocation6 + $0x8] sm:$0xff] }
  0x16   :  { %144 = vmatpush.bf16.msra.mxu0 %v428_v4  ;;  %v439_v30 = vld [vmem:[#allocation6] sm:$0xff] }
  0x17   :  { %227 = vmatpush.bf16.msra.mxu1 %v436_v5  ;;  %308 = vmatpush.bf16.msra.mxu2 %v445_v18  ;;  %v453_v31 = vld [vmem:[%s604_s4] ss:$0 sm:$0xff] }
  0x18   :  { %v454_v36 = vld [vmem:[%s606_s6] ss:$0 sm:$0xff] }
  0x1a   :  { %145 = vmatpush.bf16.msra.mxu0 %v427_v6 }
  0x1b   :  { %228 = vmatpush.bf16.msra.mxu1 %v435_v7  ;;  %309 = vmatpush.bf16.msra.mxu2 %v444_v19 }
  0x1e   :  { %146 = vmatpush.bf16.msra.mxu0 %v426_v8 }
  0x1f   :  { %229 = vmatpush.bf16.msra.mxu1 %v434_v9  ;;  %310 = vmatpush.bf16.msra.mxu2 %v443_v20 }
  0x22   :  { %147 = vmatpush.bf16.msra.mxu0 %v425_v10 }
  0x23   :  { %230 = vmatpush.bf16.msra.mxu1 %v433_v11  ;;  %311 = vmatpush.bf16.msra.mxu2 %v442_v21 }
  0x26   :  { %148 = vmatpush.bf16.msra.mxu0 %v424_v12 }
  0x27   :  { %231 = vmatpush.bf16.msra.mxu1 %v432_v15  ;;  %312 = vmatpush.bf16.msra.mxu2 %v441_v22 }
  0x2a   :  { %149 = vmatpush.bf16.msra.mxu0 %v423_v13 }
  0x2b   :  { %232 = vmatpush.bf16.msra.mxu1 %v431_v16  ;;  %313 = vmatpush.bf16.msra.mxu2 %v440_v24 }
  0x2d   :  { %150 = vmatmul.bf16.vlgmr.msra.gmra.mxu0 %v73_v14 }
  0x2f   :  { %314 = vmatpush.bf16.msra.mxu2 %v439_v30 }
  0xaa   :  { %v151_v25 = vpop.f32.mrf.mxu0 }
  0xab   :  { %v152_v26 = vadd.f32 %v452_v23, %v151_v25 }
  0xad   :  { %v155_v27 = vmax.f32 %v152_v26, 0.0 }
  0xaf   :  { %v156_v28 = vpack.c.bf16 %v155_v27, %v155_v27 }
  0xb1   :  { %233 = vmatmul.bf16.vlgmr.msra.gmra.mxu1 %v156_v28 }
  0xb2   :  { %v153_v29 = vpop.f32.mrf.mxu0 }
 0x12e   :  { %v234_v32 = vpop.f32.mrf.mxu1 }
 0x12f   :  { %v235_v33 = vadd.f32 %v453_v31, %v234_v32 }
 0x131   :  { %v238_v34 = vpack.c.bf16 %v235_v33, %v235_v33 }
 0x133   :  { %315 = vmatmul.bf16.vlgmr.msra.gmra.mxu2 %v238_v34 }
 0x136   :  { %v236_v35 = vpop.f32.mrf.mxu1 }
 0x1b6   :  { %v316_v37 = vpop.f32.mrf.mxu2 }
 0x1b7   :  { %v317_v38 = vadd.f32 %v454_v36, %v316_v37 }
 0x1b9   :  { %320 = vst [vmem:[%s607_s7] sm:$0xff] %v317_v38 }
 0x1be   :  { %v318_v39 = vpop.f32.mrf.mxu2 }
 0x1bf   :  { %325 = vsyncpa [#allocation3], 1 }
 0x1c0   :  { %326 = vsyncpa [#allocation5], 1 }

</bundles_post_ra>
